<compile_context>
chip_gen: v5e
topology: v5e:2x2
jax: 0.10.0
libtpu: 0.0.40
codegen_flags: <defaults>
</compile_context>

<pallas_src>
import functools

import jax
import jax.numpy as jnp
from jax import lax
from jax.experimental import pallas as pl
from jax.experimental.pallas import tpu as pltpu


def _min_value(dtype):
    dtype = jnp.dtype(dtype)
    if jnp.issubdtype(dtype, jnp.floating):
        return float("-inf")
    if jnp.issubdtype(dtype, jnp.integer):
        # Equivalent to torch semantics because torch enforces padding <= k/2,
        # so a pooling window can never consist solely of padded cells.
        return int(jnp.iinfo(dtype).min)
    raise ValueError(f"unsupported dtype for max pooling: {dtype}")


def _round_up(x, m):
    return -(-x // m) * m


def _maxpool_kernel(x_ref, o_ref, *, k, stride, ph, rows_out, cols_out):
    # x_ref: (ph*ph, rows_in, cols_q, tm)  phase-major coarse input, lanes = tm
    # o_ref: (rows_out, cols_out, tm)
    acc = None
    for di in range(k):
        a, pi = di // stride, di % stride          # coarse row offset, row phase
        for dj in range(k):
            b, pj = dj // stride, dj % stride      # coarse col offset, col phase
            patch = x_ref[pi * ph + pj, a:a + rows_out, b:b + cols_out, :]
            acc = patch if acc is None else jnp.maximum(acc, patch)
    o_ref[...] = acc


def _pick_tiles(Mp, rows_out, halo, ph2, colsq_pad, itemsize,
                target_block_bytes, min_steps):
    """Choose (lane_tile, output_rows_per_tile, n_row_tiles)."""
    divs = [t for t in range(128, Mp + 1, 128) if Mp % t == 0]

    def in_block_bytes(tm, tro):
        return ph2 * (tro + halo) * colsq_pad * itemsize * tm

    # 1) biggest lane tile whose full-height input block fits the target
    tm = divs[0]
    for t in divs:
        if in_block_bytes(t, rows_out) <= target_block_bytes:
            tm = t

    # 2) if even the minimum lane tile is too big, add a spatial (row) grid
    #    axis so the block size is bounded independently of the image size
    if in_block_bytes(tm, rows_out) <= target_block_bytes:
        tro, n_rt = rows_out, 1
    else:
        per_row = ph2 * colsq_pad * itemsize * tm
        tro = max(1, int(target_block_bytes // per_row) - halo)
        tro = min(tro, rows_out)
        n_rt = -(-rows_out // tro)

    # 3) try to reach a few grid steps (pipelining + both v7x cores), but never
    #    shrink blocks below ~1 MiB just to manufacture steps
    min_block = 1 << 20
    while n_rt * (Mp // tm) < min_steps:
        smaller = [t for t in divs if t < tm]
        if smaller and in_block_bytes(smaller[-1], tro) >= min_block:
            tm = smaller[-1]
        elif tro > 2 * max(halo, 1) and in_block_bytes(tm, -(-tro // 2)) >= min_block:
            tro = -(-tro // 2)
            n_rt = -(-rows_out // tro)
        else:
            break
    return tm, tro, n_rt


def maxpool2d_seq(x, k, stride, padding, *, target_block_bytes=12 << 20,
                  min_steps=8):
    """x: (B, S, C, H, W) -> (B, S, C, Ho, Wo); matches torch.nn.MaxPool2d
    applied independently at every timestep."""
    assert x.ndim == 5
    B, S, C, H, W = x.shape
    M = B * S * C
    s = stride
    Ho = (H + 2 * padding - k) // s + 1
    Wo = (W + 2 * padding - k) // s + 1
    assert Ho > 0 and Wo > 0, "pooling window larger than padded input"

    ph = min(k, s)                 # phases per axis that windows actually read
    PH = ph * ph
    halo = (k - 1) // s            # extra coarse rows a row-tile needs
    Hq, Wq = Ho + halo, Wo + halo  # coarse (stride-decimated) extents used

    dtype = x.dtype
    itemsize = jnp.dtype(dtype).itemsize
    sub = max(8, 32 // itemsize)   # VMEM sublane granularity for this dtype
    min_val = _min_value(dtype)

    # Put whichever of Hq/Wq wastes less sublane padding on the second-minor
    # (sublane) axis of the kernel block; HBM stays unpadded (bandwidth-bound).
    swap = (_round_up(Wq, sub) * Hq) > (_round_up(Hq, sub) * Wq)
    Rq, Cq = (Wq, Hq) if swap else (Hq, Wq)   # rows (3rd-minor), cols (2nd-minor)
    Ro, Co = (Wo, Ho) if swap else (Ho, Wo)

    Mp = _round_up(M, 128)         # lane-dense stores; work for both v7x cores
    tm, tro, n_rt = _pick_tiles(Mp, Ro, halo, PH, _round_up(Cq, sub), itemsize,
                                target_block_bytes, min_steps)
    trin = tro + halo if n_rt > 1 else Rq
    ro_pad = n_rt * tro

    # ---- single relayout pass (pad + phase split + transpose + row tiling);
    # under jit XLA fuses this into one copy.  Padded cells hold min_val and
    # can never win a max; cells past the last window are never read.
    LH, LW = Hq * s, Wq * s
    xp = jnp.pad(
        x,
        ((0, 0), (0, 0), (0, 0),
         (padding, max(0, LH - H - padding)),
         (padding, max(0, LW - W - padding))),
        constant_values=min_val,
    )[..., :LH, :LW]
    x7 = xp.reshape(B, S, C, Hq, s, Wq, s)[:, :, :, :, :ph, :, :ph]
    perm = (6, 4, 5, 3, 0, 1, 2) if swap else (4, 6, 3, 5, 0, 1, 2)
    xt = jnp.transpose(x7, perm).reshape(PH, Rq, Cq, M)
    if Mp != M:
        xt = jnp.pad(xt, ((0, 0), (0, 0), (0, 0), (0, Mp - M)),
                     constant_values=min_val)
    if n_rt > 1:
        need_rows = ro_pad + halo
        if need_rows > Rq:
            xt = jnp.pad(xt, ((0, 0), (0, need_rows - Rq), (0, 0), (0, 0)),
                         constant_values=min_val)
        xt = jnp.concatenate(
            [xt[:, rt * tro: rt * tro + trin] for rt in range(n_rt)], axis=1)
    # xt: (PH, n_rt * trin, Cq, Mp)

    kernel = functools.partial(_maxpool_kernel, k=k, stride=s, ph=ph,
                               rows_out=tro, cols_out=Co)

    # VMEM limit from the actual double-buffered footprint (+ slack), instead
    # of a blanket constant; stays well under v7x's 64 MiB by construction.
    in_blk = PH * trin * _round_up(Cq, sub) * tm * itemsize
    out_blk = tro * _round_up(Co, sub) * tm * itemsize
    vmem_limit = int(min(max(2 * (in_blk + out_blk) + (8 << 20), 16 << 20),
                         56 << 20))

    cost = pl.CostEstimate(
        flops=k * k * ro_pad * Co * Mp,
        transcendentals=0,
        bytes_accessed=(PH * n_rt * trin * Cq + ro_pad * Co) * Mp * itemsize,
    )

    out_t = pl.pallas_call(
        kernel,
        out_shape=jax.ShapeDtypeStruct((ro_pad, Co, Mp), dtype),
        grid=(n_rt, Mp // tm),
        in_specs=[
            pl.BlockSpec((PH, trin, Cq, tm), lambda rt, m: (0, rt, 0, m)),
        ],
        out_specs=pl.BlockSpec((tro, Co, tm), lambda rt, m: (rt, 0, m)),
        compiler_params=pltpu.CompilerParams(
            dimension_semantics=("parallel", "parallel"),
            vmem_limit_bytes=vmem_limit,
        ),
        cost_estimate=cost,
    )(xt)

    # undo the lane-major layout on the (much smaller) pooled output
    out = out_t[:Ro, :, :M].reshape(Ro, Co, B, S, C)
    perm_out = (2, 3, 4, 1, 0) if swap else (2, 3, 4, 0, 1)
    return jnp.transpose(out, perm_out)


class MaxPool2DLayer:
    """JAX/Pallas equivalent of the PyTorch MaxPool2DLayer module."""

    def __init__(self, k_size: int, stride: int, padding: int) -> None:
        self.k_size = k_size
        self.stride = stride
        self.padding = padding
        self._fn = jax.jit(functools.partial(
            maxpool2d_seq, k=k_size, stride=stride, padding=padding))

    def __call__(self, x):
        x = x[0] if isinstance(x, tuple) else x
        return self._fn(x)


def _ref_maxpool(x, k, s, p):
    B, S, C, H, W = x.shape
    r = lax.reduce_window(
        x.reshape(B * S, C, H, W), _min_value(x.dtype), lax.max,
        window_dimensions=(1, 1, k, k), window_strides=(1, 1, s, s),
        padding=((0, 0), (0, 0), (p, p), (p, p)))
    return r.reshape(B, S, C, r.shape[-2], r.shape[-1])


if __name__ == "__main__":
    key = jax.random.PRNGKey(0)
    configs = [
        # (B, S, C, H, W, k, stride, padding, extra_kwargs)
        (2, 3, 4, 16, 16, 3, 2, 1, {}),
        # small block budget forces the spatial (row-tile) grid axis + halo path
        (1, 2, 3, 20, 20, 2, 2, 0,
         dict(target_block_bytes=128 * 1024, min_steps=4)),
        # stride > kernel: exercises the reduced phase set and right-truncation
        (1, 2, 2, 19, 19, 2, 3, 0, {}),
    ]
    for i, (B, S, C, H, W, k, s, p, kw) in enumerate(configs):
        key, sub = jax.random.split(key)
        x = jax.random.normal(sub, (B, S, C, H, W), dtype=jnp.float32)
        if kw:
            fn = jax.jit(functools.partial(
                maxpool2d_seq, k=k, stride=s, padding=p, **kw))
            out = fn(x)
        else:
            layer = MaxPool2DLayer(k_size=k, stride=s, padding=p)
            out = layer((x,))          # also exercises the tuple-input path
        out = jax.block_until_ready(out)

        ref = _ref_maxpool(x, k, s, p)
        assert out.shape == ref.shape, (i, out.shape, ref.shape)
        assert out.dtype == x.dtype
        if not jnp.allclose(out, ref):
            raise AssertionError(f"Pallas max-pool mismatch in config {i}")

    print("KERNEL_OK")
</pallas_src>

<mosaic_0001>
module attributes {stable_mosaic.version = 11 : i64} {
  func.func @_maxpool_kernel(%arg0: i32, %arg1: i32, %arg2: memref<4x9x9x128xf32, #tpu.memory_space<vmem>>, %arg3: memref<8x8x128xf32, #tpu.memory_space<vmem>>) attributes {dimension_semantics = [#tpu.dimension_semantics<parallel>, #tpu.dimension_semantics<parallel>], iteration_bounds = array<i64: 1, 1>, scalar_prefetch = 0 : i64, scratch_operands = 0 : i64, tpu.core_type = #tpu.core_type<tc>, window_params = [{transform_indices = @transform_0, window_bounds = array<i64: 4, 9, 9, 128>}, {transform_indices = @transform_1, window_bounds = array<i64: 8, 8, 128>}]} {
    %c0 = arith.constant 0 : index
    %c0_0 = arith.constant 0 : index
    %c0_1 = arith.constant 0 : index
    %c0_2 = arith.constant 0 : index
    %0 = vector.load %arg2[%c0, %c0_0, %c0_1, %c0_2] : memref<4x9x9x128xf32, #tpu.memory_space<vmem>>, vector<1x8x8x128xf32>
    %1 = vector.shape_cast %0 : vector<1x8x8x128xf32> to vector<8x8x128xf32>
    %c1 = arith.constant 1 : index
    %c0_3 = arith.constant 0 : index
    %c0_4 = arith.constant 0 : index
    %c0_5 = arith.constant 0 : index
    %2 = vector.load %arg2[%c1, %c0_3, %c0_4, %c0_5] : memref<4x9x9x128xf32, #tpu.memory_space<vmem>>, vector<1x8x8x128xf32>
    %3 = vector.shape_cast %2 : vector<1x8x8x128xf32> to vector<8x8x128xf32>
    %4 = arith.maximumf %1, %3 : vector<8x8x128xf32>
    %c0_6 = arith.constant 0 : index
    %c0_7 = arith.constant 0 : index
    %c1_8 = arith.constant 1 : index
    %c0_9 = arith.constant 0 : index
    %5 = vector.load %arg2[%c0_6, %c0_7, %c1_8, %c0_9] : memref<4x9x9x128xf32, #tpu.memory_space<vmem>>, vector<1x8x8x128xf32>
    %6 = vector.shape_cast %5 : vector<1x8x8x128xf32> to vector<8x8x128xf32>
    %7 = arith.maximumf %4, %6 : vector<8x8x128xf32>
    %c2 = arith.constant 2 : index
    %c0_10 = arith.constant 0 : index
    %c0_11 = arith.constant 0 : index
    %c0_12 = arith.constant 0 : index
    %8 = vector.load %arg2[%c2, %c0_10, %c0_11, %c0_12] : memref<4x9x9x128xf32, #tpu.memory_space<vmem>>, vector<1x8x8x128xf32>
    %9 = vector.shape_cast %8 : vector<1x8x8x128xf32> to vector<8x8x128xf32>
    %10 = arith.maximumf %7, %9 : vector<8x8x128xf32>
    %c3 = arith.constant 3 : index
    %c0_13 = arith.constant 0 : index
    %c0_14 = arith.constant 0 : index
    %c0_15 = arith.constant 0 : index
    %11 = vector.load %arg2[%c3, %c0_13, %c0_14, %c0_15] : memref<4x9x9x128xf32, #tpu.memory_space<vmem>>, vector<1x8x8x128xf32>
    %12 = vector.shape_cast %11 : vector<1x8x8x128xf32> to vector<8x8x128xf32>
    %13 = arith.maximumf %10, %12 : vector<8x8x128xf32>
    %c2_16 = arith.constant 2 : index
    %c0_17 = arith.constant 0 : index
    %c1_18 = arith.constant 1 : index
    %c0_19 = arith.constant 0 : index
    %14 = vector.load %arg2[%c2_16, %c0_17, %c1_18, %c0_19] : memref<4x9x9x128xf32, #tpu.memory_space<vmem>>, vector<1x8x8x128xf32>
    %15 = vector.shape_cast %14 : vector<1x8x8x128xf32> to vector<8x8x128xf32>
    %16 = arith.maximumf %13, %15 : vector<8x8x128xf32>
    %c0_20 = arith.constant 0 : index
    %c1_21 = arith.constant 1 : index
    %c0_22 = arith.constant 0 : index
    %c0_23 = arith.constant 0 : index
    %17 = vector.load %arg2[%c0_20, %c1_21, %c0_22, %c0_23] : memref<4x9x9x128xf32, #tpu.memory_space<vmem>>, vector<1x8x8x128xf32>
    %18 = vector.shape_cast %17 : vector<1x8x8x128xf32> to vector<8x8x128xf32>
    %19 = arith.maximumf %16, %18 : vector<8x8x128xf32>
    %c1_24 = arith.constant 1 : index
    %c1_25 = arith.constant 1 : index
    %c0_26 = arith.constant 0 : index
    %c0_27 = arith.constant 0 : index
    %20 = vector.load %arg2[%c1_24, %c1_25, %c0_26, %c0_27] : memref<4x9x9x128xf32, #tpu.memory_space<vmem>>, vector<1x8x8x128xf32>
    %21 = vector.shape_cast %20 : vector<1x8x8x128xf32> to vector<8x8x128xf32>
    %22 = arith.maximumf %19, %21 : vector<8x8x128xf32>
    %c0_28 = arith.constant 0 : index
    %c1_29 = arith.constant 1 : index
    %c1_30 = arith.constant 1 : index
    %c0_31 = arith.constant 0 : index
    %23 = vector.load %arg2[%c0_28, %c1_29, %c1_30, %c0_31] : memref<4x9x9x128xf32, #tpu.memory_space<vmem>>, vector<1x8x8x128xf32>
    %24 = vector.shape_cast %23 : vector<1x8x8x128xf32> to vector<8x8x128xf32>
    %25 = arith.maximumf %22, %24 : vector<8x8x128xf32>
    %c0_32 = arith.constant 0 : index
    %c0_33 = arith.constant 0 : index
    %c0_34 = arith.constant 0 : index
    %26 = vector.load %arg3[%c0_32, %c0_33, %c0_34] : memref<8x8x128xf32, #tpu.memory_space<vmem>>, vector<8x8x128xf32>
    tpu.vector_store %arg3[%c0_32, %c0_33, %c0_34], %25 {strides = array<i32>} : memref<8x8x128xf32, #tpu.memory_space<vmem>>, vector<8x8x128xf32>,
    return
  }
  func.func @transform_0(%arg0: i32, %arg1: i32) -> (i32, i32, i32, i32) {
    %c0_i32 = arith.constant 0 : i32
    %c0_i32_0 = arith.constant 0 : i32
    %c0_i32_1 = arith.constant 0 : i32
    return %c0_i32, %arg0, %c0_i32_0, %arg1 : i32, i32, i32, i32
  }
  func.func @transform_1(%arg0: i32, %arg1: i32) -> (i32, i32, i32) {
    %c0_i32 = arith.constant 0 : i32
    %c0_i32_0 = arith.constant 0 : i32
    return %arg0, %c0_i32, %arg1 : i32, i32, i32
  }
}

</mosaic_0001>

<bundles_post_ra>
// kernel: maxpool2d_seq.1
= control target key start
LH: loop header
LB: loop body
LE: loop exit
PB: predicated region body
PF: predicated region fallthrough
CT: control target
= control target key end

     0   :  { %s432_s0 = inlined_call_operand.vmem [shape: f32[4,9,9,128], index: 0, kind: input, shape index: {}]   ;;  %s433_s1 = inlined_call_operand.vmem [shape: f32[8,8,128], index: 1, kind: output, shape index: {}]  }
   0x1   :  { %v8_v0 = vld [vmem:[%s432_s0] sm:$0xff]  ;;  %v161_v1 = vld [vmem:[%s432_s0 + $0x90] sm:$0xff] }
   0x2   :  { %v33_v2 = vld [vmem:[%s432_s0 + $0x1] sm:$0xff]  ;;  %v25_v3 = vmax.f32 %v8_v0, %v161_v1  ;;  %v193_v5 = vld [vmem:[%s432_s0 + $0x10] sm:$0xff] }
   0x3   :  { %v169_v4 = vld [vmem:[%s432_s0 + $0x120] sm:$0xff]  ;;  %v209_v7 = vld [vmem:[%s432_s0 + $0x11] sm:$0xff] }
   0x4   :  { %v245_v6 = vld [vmem:[%s432_s0 + $0xa0] sm:$0xff]  ;;  %v41_v8 = vmax.f32 %v25_v3, %v33_v2  ;;  %v177_v9 = vld [vmem:[%s432_s0 + $0x1b0] sm:$0xff] }
   0x5   :  { %v26_v10 = vmax.f32 %v193_v5, %v245_v6  ;;  %v170_v11 = vld [vmem:[%s432_s0 + $0x130] sm:$0xff]  ;;  %v194_v12 = vld [vmem:[%s432_s0 + $0x20] sm:$0xff] }
   0x6   :  { %v263_v13 = vld [vmem:[%s432_s0 + $0xb0] sm:$0xff]  ;;  %v268_v14 = vld [vmem:[%s432_s0 + $0x21] sm:$0xff]  ;;  %v58_v15 = vmax.f32 %v41_v8, %v169_v4 }
   0x7   :  { %v185_v16 = vld [vmem:[%s432_s0 + $0x121] sm:$0xff]  ;;  %v42_v17 = vmax.f32 %v26_v10, %v209_v7  ;;  %v27_v19 = vmax.f32 %v194_v12, %v263_v13  ;;  %v195_v21 = vld [vmem:[%s432_s0 + $0x30] sm:$0xff] }
   0x8   :  { %v178_v18 = vld [vmem:[%s432_s0 + $0x1c0] sm:$0xff]  ;;  %v291_v23 = vld [vmem:[%s432_s0 + $0x31] sm:$0xff]  ;;  %v75_v24 = vmax.f32 %v58_v15, %v177_v9 }
   0x9   :  { %v171_v20 = vld [vmem:[%s432_s0 + $0x140] sm:$0xff]  ;;  %v59_v25 = vmax.f32 %v42_v17, %v170_v11  ;;  %v186_v26 = vld [vmem:[%s432_s0 + $0x131] sm:$0xff]  ;;  %v43_v27 = vmax.f32 %v27_v19, %v268_v14 }
   0xa   :  { %v286_v22 = vld [vmem:[%s432_s0 + $0xc0] sm:$0xff]  ;;  %v179_v28 = vld [vmem:[%s432_s0 + $0x1d0] sm:$0xff]  ;;  %v91_v33 = vmax.f32 %v75_v24, %v185_v16 }
   0xb   :  { %v28_v29 = vmax.f32 %v195_v21, %v286_v22  ;;  %v172_v30 = vld [vmem:[%s432_s0 + $0x150] sm:$0xff]  ;;  %v196_v31 = vld [vmem:[%s432_s0 + $0x40] sm:$0xff]  ;;  %v76_v34 = vmax.f32 %v59_v25, %v178_v18  ;;  %v60_v35 = vmax.f32 %v43_v27, %v171_v20 }
   0xc   :  { %v310_v32 = vld [vmem:[%s432_s0 + $0xd0] sm:$0xff]  ;;  %v187_v36 = vld [vmem:[%s432_s0 + $0x141] sm:$0xff]  ;;  %v108_v43 = vmax.f32 %v91_v33, %v193_v5 }
   0xd   :  { %v44_v37 = vmax.f32 %v28_v29, %v291_v23  ;;  %v212_v38 = vld [vmem:[%s432_s0 + $0x41] sm:$0xff]  ;;  %v29_v40 = vmax.f32 %v196_v31, %v310_v32  ;;  %v197_v41 = vld [vmem:[%s432_s0 + $0x50] sm:$0xff]  ;;  %v92_v44 = vmax.f32 %v76_v34, %v186_v26  ;;  %v77_v45 = vmax.f32 %v60_v35, %v179_v28 }
   0xe   :  { %v180_v39 = vld [vmem:[%s432_s0 + $0x1e0] sm:$0xff]  ;;  %v213_v48 = vld [vmem:[%s432_s0 + $0x51] sm:$0xff]  ;;  %v125_v54 = vmax.f32 %v108_v43, %v245_v6 }
   0xf   :  { %v329_v42 = vld [vmem:[%s432_s0 + $0xe0] sm:$0xff]  ;;  %v61_v46 = vmax.f32 %v44_v37, %v172_v30  ;;  %v188_v49 = vld [vmem:[%s432_s0 + $0x151] sm:$0xff]  ;;  %v45_v50 = vmax.f32 %v29_v40, %v212_v38  ;;  %v109_v55 = vmax.f32 %v92_v44, %v194_v12  ;;  %v93_v56 = vmax.f32 %v77_v45, %v187_v36 }
  0x10   :  { %v173_v47 = vld [vmem:[%s432_s0 + $0x160] sm:$0xff]  ;;  %v30_v51 = vmax.f32 %v197_v41, %v329_v42  ;;  %v206_v53 = vld [vmem:[%s432_s0 + $0xf0] sm:$0xff]  ;;  %v141_v3 = vmax.f32 %v125_v54, %v209_v7 }
  0x11   :  { %v198_v52 = vld [vmem:[%s432_s0 + $0x60] sm:$0xff]  ;;  %v78_v57 = vmax.f32 %v61_v46, %v180_v39  ;;  %v181_v58 = vld [vmem:[%s432_s0 + $0x1f0] sm:$0xff]  ;;  %v62_v61 = vmax.f32 %v45_v50, %v173_v47  ;;  %v126_v4 = vmax.f32 %v109_v55, %v263_v13  ;;  %v110_v5 = vmax.f32 %v93_v56, %v195_v21 }
  0x12   :  { %v174_v59 = vld [vmem:[%s432_s0 + $0x170] sm:$0xff]  ;;  %v214_v60 = vld [vmem:[%s432_s0 + $0x61] sm:$0xff]  ;;  %v46_v63 = vmax.f32 %v30_v51, %v213_v48  ;;  %v31_v0 = vmax.f32 %v198_v52, %v206_v53  ;;  %149 = vst [vmem:[%s433_s1] sm:$0xff] %v141_v3 }
  0x13   :  { %v189_v62 = vld [vmem:[%s432_s0 + $0x161] sm:$0xff]  ;;  %v199_v1 = vld [vmem:[%s432_s0 + $0x70] sm:$0xff]  ;;  %v94_v6 = vmax.f32 %v78_v57, %v188_v49  ;;  %v79_v11 = vmax.f32 %v62_v61, %v181_v58  ;;  %v142_v13 = vmax.f32 %v126_v4, %v268_v14  ;;  %v127_v16 = vmax.f32 %v110_v5, %v286_v22 }
  0x14   :  { %v207_v2 = vld [vmem:[%s432_s0 + $0x100] sm:$0xff]  ;;  %v215_v10 = vld [vmem:[%s432_s0 + $0x71] sm:$0xff]  ;;  %v63_v12 = vmax.f32 %v46_v63, %v174_v59  ;;  %v47_v15 = vmax.f32 %v31_v0, %v214_v60 }
  0x15   :  { %v182_v8 = vld [vmem:[%s432_s0 + $0x200] sm:$0xff]  ;;  %v32_v7 = vmax.f32 %v199_v1, %v207_v2  ;;  %v111_v17 = vmax.f32 %v94_v6, %v196_v31  ;;  %v190_v18 = vld [vmem:[%s432_s0 + $0x171] sm:$0xff]  ;;  %v95_v21 = vmax.f32 %v79_v11, %v189_v62  ;;  %150 = vst [vmem:[%s433_s1 + $0x8] sm:$0xff] %v142_v13  ;;  %v143_v14 = vmax.f32 %v127_v16, %v291_v23 }
  0x16   :  { %v175_v9 = vld [vmem:[%s432_s0 + $0x180] sm:$0xff]  ;;  %v183_v19 = vld [vmem:[%s432_s0 + $0x210] sm:$0xff]  ;;  %v80_v24 = vmax.f32 %v63_v12, %v182_v8 }
  0x17   :  { %v176_v20 = vld [vmem:[%s432_s0 + $0x190] sm:$0xff]  ;;  %v64_v25 = vmax.f32 %v47_v15, %v175_v9  ;;  %v48_v26 = vmax.f32 %v32_v7, %v215_v10  ;;  %v128_v22 = vmax.f32 %v111_v17, %v310_v32  ;;  %v191_v27 = vld [vmem:[%s432_s0 + $0x181] sm:$0xff]  ;;  %v112_v29 = vmax.f32 %v95_v21, %v197_v41  ;;  %151 = vst [vmem:[%s433_s1 + $0x10] sm:$0xff] %v143_v14 }
  0x18   :  { %v184_v28 = vld [vmem:[%s432_s0 + $0x220] sm:$0xff]  ;;  %v96_v30 = vmax.f32 %v80_v24, %v190_v18  ;;  %v192_v23 = vld [vmem:[%s432_s0 + $0x191] sm:$0xff] }
  0x19   :  { %v81_v31 = vmax.f32 %v64_v25, %v183_v19  ;;  %v65_v33 = vmax.f32 %v48_v26, %v176_v20  ;;  %v144_v34 = vmax.f32 %v128_v22, %v212_v38  ;;  %v129_v32 = vmax.f32 %v112_v29, %v329_v42  ;;  %v200_v39 = vld [vmem:[%s432_s0 + $0x80] sm:$0xff]  ;;  %v208_v44 = vld [vmem:[%s432_s0 + $0x110] sm:$0xff] }
  0x1a   :  { %v113_v35 = vmax.f32 %v96_v30, %v198_v52  ;;  %v216_v47 = vld [vmem:[%s432_s0 + $0x81] sm:$0xff] }
  0x1b   :  { %v97_v36 = vmax.f32 %v81_v31, %v191_v27  ;;  %v82_v37 = vmax.f32 %v65_v33, %v184_v28  ;;  %152 = vst [vmem:[%s433_s1 + $0x18] sm:$0xff] %v144_v34  ;;  %v145_v40 = vmax.f32 %v129_v32, %v213_v48 }
  0x1c   :  { %v130_v41 = vmax.f32 %v113_v35, %v206_v53 }
  0x1d   :  { %v114_v38 = vmax.f32 %v97_v36, %v199_v1  ;;  %v98_v43 = vmax.f32 %v82_v37, %v192_v23  ;;  %153 = vst [vmem:[%s433_s1 + $0x20] sm:$0xff] %v145_v40 }
  0x1e   :  { %v146_v42 = vmax.f32 %v130_v41, %v214_v60 }
  0x1f   :  { %v131_v45 = vmax.f32 %v114_v38, %v207_v2  ;;  %v115_v46 = vmax.f32 %v98_v43, %v200_v39 }
  0x20   :  { %154 = vst [vmem:[%s433_s1 + $0x28] sm:$0xff] %v146_v42 }
  0x21   :  { %v147_v48 = vmax.f32 %v131_v45, %v215_v10  ;;  %v132_v49 = vmax.f32 %v115_v46, %v208_v44 }
  0x23   :  { %155 = vst [vmem:[%s433_s1 + $0x30] sm:$0xff] %v147_v48  ;;  %v148_v50 = vmax.f32 %v132_v49, %v216_v47 }
  0x25   :  { %156 = vst [vmem:[%s433_s1 + $0x38] sm:$0xff] %v148_v50 }

</bundles_post_ra>
